<compile_context>
chip_gen: v5e
topology: v5e:2x2
jax: 0.10.0
libtpu: 0.0.40
codegen_flags: <defaults>
</compile_context>

<pallas_src>
import jax
import jax.numpy as jnp
from jax.experimental import pallas as pl
from jax.experimental.pallas import tpu as pltpu


def _mlp_kernel(x_ref, w1_ref, b1_ref, w2_ref, b2_ref, w3_ref, b3_ref, o_ref):
    x = x_ref[...]                                            # (TB, D) f32
    # F.normalize(x, p=2, dim=1, eps=1e-12):  x / max(||x||, eps)
    # == x * rsqrt(max(sum(x^2), eps^2)); rsqrt goes to the EUP slot.
    sumsq = jnp.sum(x * x, axis=1, keepdims=True)
    xn = (x * jax.lax.rsqrt(jnp.maximum(sumsq, 1e-24))).astype(jnp.bfloat16)

    # Linear(D, H) + ReLU   (bf16 operands, f32 accumulation)
    h = jnp.dot(xn, w1_ref[...], preferred_element_type=jnp.float32) + b1_ref[...]
    h = jnp.maximum(h, 0.0).astype(jnp.bfloat16)
    # Linear(H, H) + ReLU
    h = jnp.dot(h, w2_ref[...], preferred_element_type=jnp.float32) + b2_ref[...]
    h = jnp.maximum(h, 0.0).astype(jnp.bfloat16)
    # Linear(H, Cp)  (Cp = num_classes padded to a lane-dense 128 multiple)
    o_ref[...] = jnp.dot(h, w3_ref[...], preferred_element_type=jnp.float32) + b3_ref[...]


def neural_network_forward(x, params, l_features_in, *, block_b=256):
    """Pallas forward of NeuralNetwork for 2D inputs (B, D), D <= l_features_in."""
    w1, b1, w2, b2, w3, b3 = params
    x2 = x.reshape(x.shape[0], -1).astype(jnp.float32)   # flatten (no-op for 2D)
    B, D = x2.shape
    assert D <= l_features_in, "input feature dim must be <= l_features_in"
    H = w1.shape[1]
    C = w3.shape[1]

    # Zero-padding the (normalized) input to Fin == using only the first D rows
    # of w1, so skip the pad entirely and shrink the first matmul's K dim.
    w1d = w1[:D, :].astype(jnp.bfloat16)
    w2b = w2.astype(jnp.bfloat16)

    # Lane-dense output: pad the class dim up to a multiple of 128.
    Cp = ((C + 127) // 128) * 128
    w3p = jnp.zeros((H, Cp), jnp.bfloat16).at[:, :C].set(w3.astype(jnp.bfloat16))
    b3p = jnp.zeros((1, Cp), jnp.float32).at[:, :C].set(
        b3.reshape(1, -1).astype(jnp.float32))
    b1f = b1.reshape(1, -1).astype(jnp.float32)
    b2f = b2.reshape(1, -1).astype(jnp.float32)

    # Batch tile: multiple of 8 sublanes; pad batch to a multiple of TB.
    block_b = ((block_b + 7) // 8) * 8
    TB = min(block_b, ((B + 7) // 8) * 8)
    Bp = ((B + TB - 1) // TB) * TB
    if Bp != B:
        x2 = jnp.pad(x2, ((0, Bp - B), (0, 0)))
    grid = (Bp // TB,)

    # Scoped-VMEM budget (double-buffered blocks + resident weights) with
    # headroom kept for v7x's 64 MiB physical VMEM.
    weight_bytes = (D * H + H * H + H * Cp) * 2 + (H + H + Cp) * 4
    block_bytes = TB * D * 4 + TB * Cp * 4
    vmem_limit = min(max(2 * (weight_bytes + block_bytes) + (4 << 20), 16 << 20),
                     56 << 20)

    cost = pl.CostEstimate(
        flops=2 * Bp * (D * H + H * H + H * Cp),
        transcendentals=Bp,                                   # one rsqrt per row
        bytes_accessed=Bp * D * 4 + Bp * Cp * 4 + weight_bytes,
    )

    out = pl.pallas_call(
        _mlp_kernel,
        out_shape=jax.ShapeDtypeStruct((Bp, Cp), jnp.float32),
        grid=grid,
        in_specs=[
            pl.BlockSpec((TB, D), lambda i: (i, 0)),    # x: tiled over batch
            pl.BlockSpec((D, H), lambda i: (0, 0)),     # w1[:D] resident
            pl.BlockSpec((1, H), lambda i: (0, 0)),     # b1
            pl.BlockSpec((H, H), lambda i: (0, 0)),     # w2
            pl.BlockSpec((1, H), lambda i: (0, 0)),     # b2
            pl.BlockSpec((H, Cp), lambda i: (0, 0)),    # w3 (padded cols)
            pl.BlockSpec((1, Cp), lambda i: (0, 0)),    # b3 (padded cols)
        ],
        out_specs=pl.BlockSpec((TB, Cp), lambda i: (i, 0)),
        compiler_params=pltpu.CompilerParams(
            dimension_semantics=("parallel",),
            vmem_limit_bytes=int(vmem_limit),
        ),
        cost_estimate=cost,
    )(x2, w1d, b1f, w2b, b2f, w3p, b3p)

    return out[:B, :C]


def _reference_forward_f32(x, params, l_features_in):
    """Plain-JAX f32 reference mirroring the PyTorch module exactly."""
    w1, b1, w2, b2, w3, b3 = params
    x2 = x.reshape(x.shape[0], -1).astype(jnp.float32)
    norm = jnp.sqrt(jnp.sum(x2 * x2, axis=1, keepdims=True))
    xn = x2 / jnp.maximum(norm, 1e-12)
    xn = jnp.pad(xn, ((0, 0), (0, l_features_in - xn.shape[1])))
    h = jnp.maximum(xn @ w1 + b1, 0.0)
    h = jnp.maximum(h @ w2 + b2, 0.0)
    return h @ w3 + b3


def _reference_forward_bf16(x, params, l_features_in):
    """Reference mirroring the kernel's mixed-precision math (bf16 matmuls, f32 acc)."""
    w1, b1, w2, b2, w3, b3 = params
    x2 = x.reshape(x.shape[0], -1).astype(jnp.float32)
    D = x2.shape[1]
    sumsq = jnp.sum(x2 * x2, axis=1, keepdims=True)
    xn = (x2 * jax.lax.rsqrt(jnp.maximum(sumsq, 1e-24))).astype(jnp.bfloat16)
    h = jnp.dot(xn, w1[:D].astype(jnp.bfloat16),
                preferred_element_type=jnp.float32) + b1.reshape(1, -1)
    h = jnp.maximum(h, 0.0).astype(jnp.bfloat16)
    h = jnp.dot(h, w2.astype(jnp.bfloat16),
                preferred_element_type=jnp.float32) + b2.reshape(1, -1)
    h = jnp.maximum(h, 0.0).astype(jnp.bfloat16)
    return jnp.dot(h, w3.astype(jnp.bfloat16),
                   preferred_element_type=jnp.float32) + b3.reshape(1, -1)


if __name__ == "__main__":
    # Small, deterministic configuration with the module's structure
    # (module defaults are 4096/512; scaled down for the test).
    num_classes = 16
    l_features_in = 256     # "l_features_in" in the module
    l_features = 128        # hidden width
    batch = 250             # not a tile multiple -> exercises batch padding
    d_in = 200              # raw feature dim < l_features_in -> exercises w1 slice

    key = jax.random.PRNGKey(0)
    ks = jax.random.split(key, 7)
    x = jax.random.normal(ks[0], (batch, d_in), dtype=jnp.float32)

    # Deterministic parameter init. PyTorch nn.Linear stores weight as
    # (out, in); we build (in, out) directly for the kernel's x @ W layout.
    w1 = jax.random.normal(ks[1], (l_features_in, l_features), jnp.float32) * 0.02
    b1 = jax.random.normal(ks[2], (1, l_features), jnp.float32) * 0.02
    w2 = jax.random.normal(ks[3], (l_features, l_features), jnp.float32) * 0.02
    b2 = jax.random.normal(ks[4], (1, l_features), jnp.float32) * 0.02
    w3 = jax.random.normal(ks[5], (l_features, num_classes), jnp.float32) * 0.02
    b3 = jax.random.normal(ks[6], (1, num_classes), jnp.float32) * 0.02
    params = (w1, b1, w2, b2, w3, b3)

    out = neural_network_forward(x, params, l_features_in, block_b=128)
    out = jax.block_until_ready(out)
    assert out.shape == (batch, num_classes)

    # Tight check against a reference using the same mixed precision as the kernel.
    ref_mixed = _reference_forward_bf16(x, params, l_features_in)
    assert jnp.allclose(out, ref_mixed, atol=1e-4, rtol=1e-4), "mismatch vs bf16 reference"

    # Loose check against the exact f32 PyTorch-equivalent math (bf16 rounding slack).
    ref_f32 = _reference_forward_f32(x, params, l_features_in)
    assert jnp.allclose(out, ref_f32, atol=1e-2), "mismatch vs f32 reference"

    print("KERNEL_OK")
</pallas_src>

<mosaic_0001>
module attributes {stable_mosaic.version = 11 : i64} {
  func.func @_mlp_kernel(%arg0: i32, %arg1: memref<128x200xf32, #tpu.memory_space<vmem>>, %arg2: memref<200x128xbf16, #tpu.memory_space<vmem>>, %arg3: memref<1x128xf32, #tpu.memory_space<vmem>>, %arg4: memref<128x128xbf16, #tpu.memory_space<vmem>>, %arg5: memref<1x128xf32, #tpu.memory_space<vmem>>, %arg6: memref<128x128xbf16, #tpu.memory_space<vmem>>, %arg7: memref<1x128xf32, #tpu.memory_space<vmem>>, %arg8: memref<128x128xf32, #tpu.memory_space<vmem>>) attributes {dimension_semantics = [#tpu.dimension_semantics<parallel>], iteration_bounds = array<i64: 2>, scalar_prefetch = 0 : i64, scratch_operands = 0 : i64, tpu.core_type = #tpu.core_type<tc>, window_params = [{transform_indices = @transform_0, window_bounds = array<i64: 128, 200>}, {pipeline_mode = #tpu.pipeline_mode<synchronous>, transform_indices = @transform_1, window_bounds = array<i64: 200, 128>}, {pipeline_mode = #tpu.pipeline_mode<synchronous>, transform_indices = @transform_2, window_bounds = array<i64: 1, 128>}, {pipeline_mode = #tpu.pipeline_mode<synchronous>, transform_indices = @transform_3, window_bounds = array<i64: 128, 128>}, {pipeline_mode = #tpu.pipeline_mode<synchronous>, transform_indices = @transform_4, window_bounds = array<i64: 1, 128>}, {pipeline_mode = #tpu.pipeline_mode<synchronous>, transform_indices = @transform_5, window_bounds = array<i64: 128, 128>}, {pipeline_mode = #tpu.pipeline_mode<synchronous>, transform_indices = @transform_6, window_bounds = array<i64: 1, 128>}, {transform_indices = @transform_7, window_bounds = array<i64: 128, 128>}]} {
    %c0 = arith.constant 0 : index
    %c0_0 = arith.constant 0 : index
    %0 = vector.load %arg1[%c0, %c0_0] : memref<128x200xf32, #tpu.memory_space<vmem>>, vector<128x200xf32>
    %1 = arith.mulf %0, %0 : vector<128x200xf32>
    %cst = arith.constant dense<0.000000e+00> : vector<128xf32>
    %2 = vector.multi_reduction <add>, %1, %cst [1] : vector<128x200xf32> to vector<128xf32>
    %3 = vector.shape_cast %2 : vector<128xf32> to vector<128x1xf32>
    %cst_1 = arith.constant 1.000000e-24 : f32
    %4 = vector.broadcast %cst_1 : f32 to vector<128x1xf32>
    %5 = arith.maximumf %3, %4 : vector<128x1xf32>
    %6 = math.rsqrt %5 : vector<128x1xf32>
    %7 = vector.broadcast %6 : vector<128x1xf32> to vector<128x200xf32>
    %8 = arith.mulf %0, %7 : vector<128x200xf32>
    %9 = arith.truncf %8 : vector<128x200xf32> to vector<128x200xbf16>
    %c0_2 = arith.constant 0 : index
    %c0_3 = arith.constant 0 : index
    %10 = vector.load %arg2[%c0_2, %c0_3] : memref<200x128xbf16, #tpu.memory_space<vmem>>, vector<200x128xbf16>
    %cst_4 = arith.constant dense<0.000000e+00> : vector<128x128xf32>
    %11 = tpu.matmul %9, %10, %cst_4 {dimension_numbers = #tpu.dot_dimension_numbers<[1], [0], [0], [1], [0, 0, 1, 1], [], []>} : vector<128x200xbf16>, vector<200x128xbf16>, vector<128x128xf32> -> vector<128x128xf32>
    %c0_5 = arith.constant 0 : index
    %c0_6 = arith.constant 0 : index
    %12 = vector.load %arg3[%c0_5, %c0_6] : memref<1x128xf32, #tpu.memory_space<vmem>>, vector<1x128xf32>
    %13 = vector.broadcast %12 : vector<1x128xf32> to vector<128x128xf32>
    %14 = arith.addf %11, %13 : vector<128x128xf32>
    %cst_7 = arith.constant 0.000000e+00 : f32
    %15 = vector.broadcast %cst_7 : f32 to vector<128x128xf32>
    %16 = arith.maximumf %14, %15 : vector<128x128xf32>
    %17 = arith.truncf %16 : vector<128x128xf32> to vector<128x128xbf16>
    %c0_8 = arith.constant 0 : index
    %c0_9 = arith.constant 0 : index
    %18 = vector.load %arg4[%c0_8, %c0_9] : memref<128x128xbf16, #tpu.memory_space<vmem>>, vector<128x128xbf16>
    %cst_10 = arith.constant dense<0.000000e+00> : vector<128x128xf32>
    %19 = tpu.matmul %17, %18, %cst_10 {dimension_numbers = #tpu.dot_dimension_numbers<[1], [0], [0], [1], [0, 0, 1, 1], [], []>} : vector<128x128xbf16>, vector<128x128xbf16>, vector<128x128xf32> -> vector<128x128xf32>
    %c0_11 = arith.constant 0 : index
    %c0_12 = arith.constant 0 : index
    %20 = vector.load %arg5[%c0_11, %c0_12] : memref<1x128xf32, #tpu.memory_space<vmem>>, vector<1x128xf32>
    %21 = vector.broadcast %20 : vector<1x128xf32> to vector<128x128xf32>
    %22 = arith.addf %19, %21 : vector<128x128xf32>
    %cst_13 = arith.constant 0.000000e+00 : f32
    %23 = vector.broadcast %cst_13 : f32 to vector<128x128xf32>
    %24 = arith.maximumf %22, %23 : vector<128x128xf32>
    %25 = arith.truncf %24 : vector<128x128xf32> to vector<128x128xbf16>
    %c0_14 = arith.constant 0 : index
    %c0_15 = arith.constant 0 : index
    %26 = vector.load %arg6[%c0_14, %c0_15] : memref<128x128xbf16, #tpu.memory_space<vmem>>, vector<128x128xbf16>
    %cst_16 = arith.constant dense<0.000000e+00> : vector<128x128xf32>
    %27 = tpu.matmul %25, %26, %cst_16 {dimension_numbers = #tpu.dot_dimension_numbers<[1], [0], [0], [1], [0, 0, 1, 1], [], []>} : vector<128x128xbf16>, vector<128x128xbf16>, vector<128x128xf32> -> vector<128x128xf32>
    %c0_17 = arith.constant 0 : index
    %c0_18 = arith.constant 0 : index
    %28 = vector.load %arg7[%c0_17, %c0_18] : memref<1x128xf32, #tpu.memory_space<vmem>>, vector<1x128xf32>
    %29 = vector.broadcast %28 : vector<1x128xf32> to vector<128x128xf32>
    %30 = arith.addf %27, %29 : vector<128x128xf32>
    %c0_19 = arith.constant 0 : index
    %c0_20 = arith.constant 0 : index
    %31 = vector.load %arg8[%c0_19, %c0_20] : memref<128x128xf32, #tpu.memory_space<vmem>>, vector<128x128xf32>
    tpu.vector_store %arg8[%c0_19, %c0_20], %30 {strides = array<i32>} : memref<128x128xf32, #tpu.memory_space<vmem>>, vector<128x128xf32>,
    return
  }
  func.func @transform_0(%arg0: i32) -> (i32, i32) {
    %c0_i32 = arith.constant 0 : i32
    %c0_i32_0 = arith.constant 0 : i32
    return %arg0, %c0_i32 : i32, i32
  }
  func.func @transform_1(%arg0: i32) -> (i32, i32) {
    %c0_i32 = arith.constant 0 : i32
    %c0_i32_0 = arith.constant 0 : i32
    %c0_i32_1 = arith.constant 0 : i32
    return %c0_i32, %c0_i32_0 : i32, i32
  }
  func.func @transform_2(%arg0: i32) -> (i32, i32) {
    %c0_i32 = arith.constant 0 : i32
    %c0_i32_0 = arith.constant 0 : i32
    %c0_i32_1 = arith.constant 0 : i32
    return %c0_i32, %c0_i32_0 : i32, i32
  }
  func.func @transform_3(%arg0: i32) -> (i32, i32) {
    %c0_i32 = arith.constant 0 : i32
    %c0_i32_0 = arith.constant 0 : i32
    %c0_i32_1 = arith.constant 0 : i32
    return %c0_i32, %c0_i32_0 : i32, i32
  }
  func.func @transform_4(%arg0: i32) -> (i32, i32) {
    %c0_i32 = arith.constant 0 : i32
    %c0_i32_0 = arith.constant 0 : i32
    %c0_i32_1 = arith.constant 0 : i32
    return %c0_i32, %c0_i32_0 : i32, i32
  }
  func.func @transform_5(%arg0: i32) -> (i32, i32) {
    %c0_i32 = arith.constant 0 : i32
    %c0_i32_0 = arith.constant 0 : i32
    %c0_i32_1 = arith.constant 0 : i32
    return %c0_i32, %c0_i32_0 : i32, i32
  }
  func.func @transform_6(%arg0: i32) -> (i32, i32) {
    %c0_i32 = arith.constant 0 : i32
    %c0_i32_0 = arith.constant 0 : i32
    %c0_i32_1 = arith.constant 0 : i32
    return %c0_i32, %c0_i32_0 : i32, i32
  }
  func.func @transform_7(%arg0: i32) -> (i32, i32) {
    %c0_i32 = arith.constant 0 : i32
    %c0_i32_0 = arith.constant 0 : i32
    return %arg0, %c0_i32 : i32, i32
  }
}

</mosaic_0001>

<bundles_post_ra>
// kernel: tpu_custom_call.1
= control target key start
LH: loop header
LB: loop body
LE: loop exit
PB: predicated region body
PF: predicated region fallthrough
CT: control target
= control target key end

     0   :  { %12 = vsyncpa [#allocation3], 0  ;;  %s2077_s0 = inlined_call_operand.vmem [shape: f32[256,200], index: 0, kind: input, shape index: {}]   ;;  %s2078_s1 = inlined_call_operand.vmem [shape: bf16[200,128], index: 1, kind: input, shape index: {}]   ;;  %s2079_s2 = inlined_call_operand.vmem [shape: f32[1,128], index: 2, kind: input, shape index: {}]   ;;  %s2080_s3 = inlined_call_operand.vmem [shape: bf16[128,128], index: 3, kind: input, shape index: {}]   ;;  %s2081_s4 = inlined_call_operand.vmem [shape: f32[1,128], index: 4, kind: input, shape index: {}]   ;;  %s2082_s5 = inlined_call_operand.vmem [shape: bf16[128,128], index: 5, kind: input, shape index: {}]   ;;  %s2083_s6 = inlined_call_operand.vmem [shape: f32[1,128], index: 6, kind: input, shape index: {}]   ;;  %s2084_s7 = inlined_call_operand.hbm [shape: f32[256,128], index: 7, kind: output, shape index: {}]  }
   0x1   :  { %14 = vsyncpa [#allocation3 + $0x1], 0  ;;  %s1588_s24 = smov 0   ;;  %s1590_s25 = smov 0  }
   0x2   :  { %s1592_s26 = smov 0   ;;  %s1594_s27 = smov 0  }
   0x3 LB: > { %s1609_s28 = sadd.s32 4294967295, %s1544_s27   ;;  %s1243_s29 = sadd.s32 4294967294, %s1544_s27   ;;  %s1544_s27 = sphi %s1594_s27, %s2090_s27   ;;  %s1540_s26 = sphi %s1592_s26, %s2089_s26   ;;  %s1536_s25 = sphi %s1590_s25, %s2088_s25   ;;  %s1532_s24 = sphi %s1588_s24, %s2087_s24  }
   0x4   : > { %s1613_s30 = sadd.s32 1, %s1544_s27   ;;  %s179_s8 = sadd.s32 1, %s1540_s26 }
   0x5   : > { %s176_s9 = ssub.s32 %s1544_s27, %s1613_s30  ;;  %p189_p0 = scmp.ne.s32.totalorder %s1540_s26, %s1536_s25 }
   0x6   : > { %p177_p1 = scmp.eq.s32.totalorder %s176_s9, 0  ;;  %p190_p2 = scmp.eq.s32.totalorder %s1609_s28, 1 }
   0x7   : > { %p195_p3 = scmp.ne.s32.totalorder %s1536_s25, %s1532_s24  ;;  %p196_p4 = scmp.eq.s32.totalorder %s1243_s29, 1 }
   0x8   : > { %s1624_s10 = scalar_select %p177_p1, %s1540_s26, %s179_s8  }
   0x9   : > { %p1626_p5 = por %p190_p2, %p189_p0  ;;  %p1630_p6 = por %p196_p4, %p195_p3 }
   0xa   : > { %p1246_p7 = scmp.ge.s32.totalorder %s1544_s27, 1  ;;  %p242_p8 = scmp.lt.s32.totalorder %s1544_s27, 3 }
   0xc   : > { %p243_p9 = pnand %p1246_p7, %p242_p8 }
   0xd   : > { %s1248_s13 = sshll.u32 (!%p243_p9), %s1609_s28, 4  ;;  %s272_s29 = sand.u32 (!%p243_p9), 1, %s1536_s25  }
   0xe   : > { %246 = sbr.rel (%p243_p9) target bundleno = 723 (0x2d3), region = 48  ;;  %p276_p10 = scmp.lt.s32.totalorder (!%p243_p9), %s1248_s13, 31 }
   0xf   : > { %s1247_s8 = sshll.u32 (!%p243_p9), %s272_s29, 7  ;;  %s1405_s15 = sshll.u32 (!%p243_p9), %s1609_s28, 7 }
  0x10   : > { %s1177_s18 = scalar_lea.hbm (!%p243_p9), %s2084_s7, %s1405_s15  ;;  %s1166_s21 = scalar_lea.sflag (!%p243_p9), [#allocation3], %s272_s29 }
  0x11   : > { %s1180_s20 = sshll.u32 (!%p243_p9), %s1177_s18, 4  ;;  %s1502_s9 = scalar_lea.hbm (!%p243_p9), %s2084_s7, 256  ;;  %s1181_s20 = int_to_ptr.hbm [resolvable:$true] %s1180_s20 }
  0x12   : > { %s1496_s22 = sshra.s32 (!%p243_p9), %s1181_s20, 4  ;;  %s1497_s22 = int_to_ptr.hbm [resolvable:$true] %s1496_s22 }
  0x13   : > { %s2092_s13 = smov (!%p276_p10, %s1248_s13), 31  ;;  %vm348_vm0 = vcmask 588800   ;;  %vm765_vm1 = vcmask 1043456   ;;  %s1498_s28 = scalar_lea.hbm %s1497_s22, 128 }
  0x14   : > { %s1376_s14 = sshll.u32 %s2092_s13, 4  ;;  %p1499_p11 = scmp.ne.s32.totalorder %s1497_s22, %s1498_s28 }
  0x15   : > { %s1640_s17 = scalar_lea.vmem %s2077_s0, %s1376_s14  ;;  %s2025_s14 = scalar_lea.vmem [#allocation2], %s1247_s8 }
  0x16   : > { %v1643_v0 = vld [vmem:[%s1640_s17 + $0x20] sm:$0xff]  ;;  %v1646_v1 = vld [vmem:[%s1640_s17 + $0x28] sm:$0xff]  ;;  %v1661_v7 = vld [vmem:[%s1640_s17 + $0x38] sm:$0xff]  ;;  %s1178_s19 = sshll.u32 %s2025_s14, 4  ;;  %p1500_p12 = pnand %p1499_p11, %p1626_p5  ;;  %s1179_s19 = int_to_ptr.vmem [resolvable:$true] %s1178_s19 }
  0x17   : > { %v1649_v2 = vld [vmem:[%s1640_s17] sm:$0xff]  ;;  %v320_v3 = vmul.f32 %v1643_v0, %v1643_v0  ;;  %v321_v4 = vmul.f32 %v1646_v1, %v1646_v1  ;;  %v1656_v5 = vld [vmem:[%s1640_s17 + $0x8] sm:$0xff]  ;;  %v1666_v9 = vld [vmem:[%s1640_s17 + $0x18] sm:$0xff]  ;;  %v323_v13 = vmul.f32 %v1661_v7, %v1661_v7  ;;  %p1503_p0 = scmp.lt.s32.totalorder %s1497_s22, %s2084_s7  ;;  %p1504_p1 = scmp.lt.s32.totalorder %s1502_s9, %s1498_s28 }
  0x18   : > { %v316_v6 = vmul.f32 %v1649_v2, %v1649_v2  ;;  %v317_v8 = vmul.f32 %v1656_v5, %v1656_v5  ;;  %v1669_v10 = vld [vmem:[%s1640_s17 + $0x40] sm:$0xff]  ;;  %v1673_v12 = vld [vmem:[%s1640_s17 + $0x30] sm:$0xff]  ;;  %v1678_v14 = vld [vmem:[%s1640_s17 + $0x48] sm:$0xff]  ;;  %v319_v20 = vmul.f32 %v1666_v9, %v1666_v9  ;;  %p1501_p13 = pneg %p1500_p12 }
  0x19   : > { %v357_v11 = vsel %vm348_vm0, %v321_v4, 0.0  ;;  %v324_v15 = vmul.f32 %v1669_v10, %v1669_v10  ;;  %v1683_v16 = vld [vmem:[%s1640_s17 + $0x58] sm:$0xff]  ;;  %v1687_v19 = vld [vmem:[%s1640_s17 + $0x10] sm:$0xff]  ;;  %v325_v21 = vmul.f32 %v1678_v14, %v1678_v14  ;;  %v322_v23 = vmul.f32 %v1673_v12, %v1673_v12  ;;  %v1711_v33 = vld [vmem:[%s1640_s17 + $0x68] sm:$0xff]  ;;  %p1505_p2 = por %p1504_p1, %p1503_p0 }
  0x1a   : > { %v358_v17 = vadd.f32 %v357_v11, %v320_v3  ;;  %v349_v18 = vsel %vm348_vm0, %v317_v8, 0.0  ;;  %v1697_v25 = vld [vmem:[%s1640_s17 + $0x50] sm:$0xff]  ;;  %v327_v26 = vmul.f32 %v1683_v16, %v1683_v16  ;;  %v361_v27 = vsel %vm348_vm0, %v323_v13, 0.0  ;;  %v1706_v31 = vld [vmem:[%s1640_s17 + $0x78] sm:$0xff]  ;;  %v1720_v39 = vld [vmem:[%s1640_s17 + $0x88] sm:$0xff] }
  0x1b   : > { %v350_v22 = vadd.f32 %v349_v18, %v316_v6  ;;  %v365_v24 = vsel %vm348_vm0, %v325_v21, 0.0  ;;  %v318_v28 = vmul.f32 %v1687_v19, %v1687_v19  ;;  %v353_v30 = vsel %vm348_vm0, %v319_v20, 0.0  ;;  %v1715_v37 = vld [vmem:[%s1640_s17 + $0x70] sm:$0xff]  ;;  %v1723_v40 = vld [vmem:[%s1640_s17 + $0x60] sm:$0xff]  ;;  %v1739_v49 = vld [vmem:[%s1640_s17 + $0xa8] sm:$0xff]  ;;  %p1506_p3 = pnand %p1505_p2, %p1501_p13 }
  0x1c   : > { %359 = vadd.xlane.f32.xlu1 %v358_v17  ;;  %v366_v29 = vadd.f32 %v365_v24, %v324_v15  ;;  %v326_v32 = vmul.f32 %v1697_v25, %v1697_v25  ;;  %v362_v34 = vadd.f32 %v361_v27, %v322_v23  ;;  %v369_v35 = vsel %vm348_vm0, %v327_v26, 0.0  ;;  %v1730_v44 = vld [vmem:[%s1640_s17 + $0x80] sm:$0xff]  ;;  %v1744_v51 = vld [vmem:[%s1640_s17 + $0x98] sm:$0xff]  ;;  %v1756_v58 = vld [vmem:[%s1640_s17 + $0x90] sm:$0xff] }
  0x1d   : > { %351 = vadd.xlane.f32.xlu0 %v350_v22  ;;  %v354_v36 = vadd.f32 %v353_v30, %v318_v28  ;;  %v331_v38 = vmul.f32 %v1706_v31, %v1706_v31  ;;  %v329_v41 = vmul.f32 %v1711_v33, %v1711_v33  ;;  %v330_v43 = vmul.f32 %v1715_v37, %v1715_v37  ;;  %v1748_v55 = vld [vmem:[%s1640_s17 + $0xb8] sm:$0xff]  ;;  %v1751_v56 = vld [vmem:[%s1640_s17 + $0xa0] sm:$0xff]  ;;  %v1761_v61 = vld [vmem:[%s1640_s17 + $0xb0] sm:$0xff] }
  0x1e   : > { %367 = vadd.xlane.f32.xlu2 %v366_v29  ;;  %v370_v42 = vadd.f32 %v369_v35, %v326_v32  ;;  %v333_v45 = vmul.f32 %v1720_v39, %v1720_v39  ;;  %v328_v47 = vmul.f32 %v1723_v40, %v1723_v40  ;;  %v332_v50 = vmul.f32 %v1730_v44, %v1730_v44  ;;  %v1772_v8 = vld [vmem:[%s1640_s17 + $0xd8] sm:$0xff]  ;;  %v1777_v13 = vld [vmem:[%s1640_s17 + $0xc8] sm:$0xff]  ;;  %v1781_v20 = vld [vmem:[%s1640_s17 + $0xd0] sm:$0xff] }
  0x1f   : > { %v377_v46 = vsel %vm348_vm0, %v331_v38, 0.0  ;;  %v373_v48 = vsel %vm348_vm0, %v329_v41, 0.0  ;;  %v337_v57 = vmul.f32 %v1739_v49, %v1739_v49  ;;  %v335_v59 = vmul.f32 %v1744_v51, %v1744_v51  ;;  %v1786_v22 = vld [vmem:[%s1640_s17 + $0xe8] sm:$0xff]  ;;  %v1789_v23 = vld [vmem:[%s1640_s17 + $0xc0] sm:$0xff] }
  0x20   : > { %v378_v52 = vadd.f32 %v377_v46, %v330_v43  ;;  %v381_v53 = vsel %vm348_vm0, %v333_v45, 0.0  ;;  %v374_v54 = vadd.f32 %v373_v48, %v328_v47  ;;  %v339_v62 = vmul.f32 %v1748_v55, %v1748_v55  ;;  %v1796_v28 = vld [vmem:[%s1640_s17 + $0xe0] sm:$0xff]  ;;  %v1811_v43 = vld [vmem:[%s1640_s17 + $0xf0] sm:$0xff] }
  0x21   : > { %v382_v60 = vadd.f32 %v381_v53, %v332_v50  ;;  %v336_v63 = vmul.f32 %v1751_v56, %v1751_v56  ;;  %v334_v3 = vmul.f32 %v1756_v58, %v1756_v58  ;;  %v389_v4 = vsel %vm348_vm0, %v337_v57, 0.0  ;;  %v1383_v53 = vld [vmem:[%s2078_s1 + $0x30] sm:$0xff]  ;;  %v661_v57 = vld [vmem:[%s2078_s1 + $0x60] sm:$0xf] }
  0x22   : > { %v385_v6 = vsel %vm348_vm0, %v335_v59, 0.0  ;;  %v338_v11 = vmul.f32 %v1761_v61, %v1761_v61  ;;  %v393_v15 = vsel %vm348_vm0, %v339_v62, 0.0  ;;  %v343_v21 = vmul.f32 %v1772_v8, %v1772_v8  ;;  %v1381_v62 = vld [vmem:[%s2078_s1 + $0x20] sm:$0xff] }
  0x23   : > { %v390_v17 = vadd.f32 %v389_v4, %v336_v63  ;;  %v386_v18 = vadd.f32 %v385_v6, %v334_v3  ;;  %v341_v24 = vmul.f32 %v1777_v13, %v1777_v13  ;;  %v342_v27 = vmul.f32 %v1781_v20, %v1781_v20  ;;  %v1380_v3 = vld [vmem:[%s2078_s1 + $0x18] sm:$0xff]  ;;  %v1379_v6 = vld [vmem:[%s2078_s1 + $0x10] sm:$0xff] }
  0x24   : > { %363 = vadd.xlane.f32.xlu1 %v362_v34  ;;  %v394_v26 = vadd.f32 %v393_v15, %v338_v11  ;;  %v345_v29 = vmul.f32 %v1786_v22, %v1786_v22  ;;  %v401_v30 = vsel %vm348_vm0, %v343_v21, 0.0  ;;  %v340_v32 = vmul.f32 %v1789_v23, %v1789_v23  ;;  %v1388_v4 = vld [vmem:[%s2078_s1 + $0x58] sm:$0xff]  ;;  %v1387_v11 = vld [vmem:[%s2078_s1 + $0x50] sm:$0xff]  ;;  %v1378_v15 = vld [vmem:[%s2078_s1 + $0x8] sm:$0xff] }
  0x25   : > { %355 = vadd.xlane.f32.xlu0 %v354_v36  ;;  %v397_v34 = vsel %vm348_vm0, %v341_v24, 0.0  ;;  %v344_v35 = vmul.f32 %v1796_v28, %v1796_v28  ;;  %v1807_v36 = vld [vmem:[%s1640_s17 + $0xf8] sm:$0xff]  ;;  %v402_v38 = vadd.f32 %v401_v30, %v342_v27  ;;  %v346_v47 = vmul.f32 %v1811_v43, %v1811_v43  ;;  %v1385_v21 = vld [vmem:[%s2078_s1 + $0x40] sm:$0xff] }
  0x26   : > { %371 = vadd.xlane.f32.xlu2 %v370_v42  ;;  %v405_v41 = vsel %vm348_vm0, %v345_v29, 0.0  ;;  %v398_v42 = vadd.f32 %v397_v34, %v340_v32  ;;  %v347_v45 = vmul.f32 %v1807_v36, %v1807_v36  ;;  %v715_v59 = vunpack.c.l.b16 %v661_v57 }
  0x27   : > { %v406_v46 = vadd.f32 %v405_v41, %v344_v35 }
  0x28   : > { %v409_v48 = vsel %vm348_vm0, %v347_v45, 0.0 }
  0x29   : > { %v410_v50 = vadd.f32 %v409_v48, %v346_v47 }
  0x2c   : > { %379 = vadd.xlane.f32.xlu1 %v378_v52  ;;  %v1384_v52 = vld [vmem:[%s2078_s1 + $0x38] sm:$0xff] }
  0x2d   : > { %375 = vadd.xlane.f32.xlu0 %v374_v54  ;;  %769 = vmatpush.bf16.msra.mxu0 %v1384_v52  ;;  %v1382_v54 = vld [vmem:[%s2078_s1 + $0x28] sm:$0xff] }
  0x2e   : > { %383 = vadd.xlane.f32.xlu2 %v382_v60  ;;  %v728_v60 = vpack.c.b16 %v715_v59, %v715_v59 }
  0x30   : > { %v767_v63 = vsel %vm765_vm1, %v728_v60, 0 }
  0x31   : > { %770 = vmatpush.bf16.msra.mxu0 %v1383_v53  ;;  %821 = vmatpush.bf16.msra.mxu1 %v767_v63 }
  0x34   : > { %391 = vadd.xlane.f32.xlu1 %v390_v17  ;;  %v1386_v17 = vld [vmem:[%s2078_s1 + $0x48] sm:$0xff] }
  0x35   : > { %387 = vadd.xlane.f32.xlu0 %v386_v18  ;;  %771 = vmatpush.bf16.msra.mxu0 %v1382_v54  ;;  %v1377_v18 = vld [vmem:[%s2078_s1] sm:$0xff] }
  0x36   : > { %395 = vadd.xlane.f32.xlu2 %v394_v26  ;;  %822 = vmatpush.bf16.msra.mxu1 %v1388_v4 }
  0x39   : > { %772 = vmatpush.bf16.msra.mxu0 %v1381_v62 }
  0x3a   : > { %823 = vmatpush.bf16.msra.mxu1 %v1387_v11 }
  0x3c   : > { %403 = vadd.xlane.f32.xlu1 %v402_v38 }
  0x3d   : > { %399 = vadd.xlane.f32.xlu0 %v398_v42  ;;  %773 = vmatpush.bf16.msra.mxu0 %v1380_v3 }
  0x3e   : > { %407 = vadd.xlane.f32.xlu2 %v406_v46  ;;  %824 = vmatpush.bf16.msra.mxu1 %v1386_v17 }
  0x41   : > { %774 = vmatpush.bf16.msra.mxu0 %v1379_v6 }
  0x42   : > { %825 = vmatpush.bf16.msra.mxu1 %v1385_v21 }
  0x45   : > { %411 = vadd.xlane.f32.xlu0 %v410_v50  ;;  %775 = vmatpush.bf16.msra.mxu0 %v1378_v15 }
  0x49   : > { %776 = vmatpush.bf16.msra.mxu0 %v1377_v18 }
  0x8f   : > { %v360_v24 = vpop.xlane.xlu1 %359 }
  0x90   : > { %v352_v26 = vpop.xlane.xlu0 %351  ;;  %v415_v35 = vmax.f32 %v360_v24, 1e-24 }
  0x91   : > { %v413_v27 = vmax.f32 %v352_v26, 1e-24  ;;  %v368_v42 = vpop.xlane.xlu2 %367 }
  0x92   : > { %v1857_v60 = vmax.f32 %v368_v42, 1e-24  ;;  %vm455_vm10 = vweird.f32 %v415_v35 }
  0x93   : > { %1450 = vrsqrt.f32 %v413_v27  ;;  %vm435_vm3 = vweird.f32 %v413_v27 }
  0x94   : > { %vm475_vm14 = vweird.f32 %v1857_v60 }
  0x97   : > { %v364_v29 = vpop.xlane.xlu1 %363 }
  0x98   : > { %v416_v30 = vmax.f32 %v364_v29, 1e-24  ;;  %v356_v32 = vpop.xlane.xlu0 %355 }
  0x99   : > { %v1451_v34 = vpop.eup %1450  ;;  %v414_v38 = vmax.f32 %v356_v32, 1e-24  ;;  %v372_v59 = vpop.xlane.xlu2 %371 }
  0x9a   : > { %v430_v41 = vmul.f32 %v1451_v34, %v413_v27  ;;  %1452 = vrsqrt.f32 %v416_v30  ;;  %vm436_vm2 = vweird.f32 %v1451_v34  ;;  %v1859_v4 = vmax.f32 %v372_v59, 1e-24 }
  0x9b   : > { %1454 = vrsqrt.f32 %v414_v38  ;;  %vm437_vm5 = vmor %vm435_vm3, %vm436_vm2  ;;  %vm445_vm6 = vweird.f32 %v414_v38  ;;  %vm465_vm8 = vweird.f32 %v416_v30 }
  0x9c   : > { %v431_v45 = vmul.f32 %v1451_v34, %v430_v41  ;;  %1456 = vrsqrt.f32 %v415_v35  ;;  %vm485_vm1 = vweird.f32 %v1859_v4 }
  0x9d   : > { %1458 = vrsqrt.f32 %v1857_v60 }
  0x9e   : > { %v432_v46 = vmul.f32 0.5, %v431_v45  ;;  %1460 = vrsqrt.f32 %v1859_v4 }
  0xa0   : > { %v1453_v47 = vpop.eup %1452  ;;  %v433_v50 = vsub.f32 1.5, %v432_v46 }
  0xa1   : > { %v1455_v48 = vpop.eup %1454  ;;  %v460_v54 = vmul.f32 %v1453_v47, %v416_v30  ;;  %vm466_vm9 = vweird.f32 %v1453_v47 }
  0xa2   : > { %v440_v52 = vmul.f32 %v1455_v48, %v414_v38  ;;  %v1457_v53 = vpop.eup %1456  ;;  %v434_v3 = vmul.f32 %v1451_v34, %v433_v50  ;;  %vm446_vm4 = vweird.f32 %v1455_v48  ;;  %vm467_vm12 = vmor %vm465_vm8, %vm466_vm9 }
  0xa3   : > { %v450_v62 = vmul.f32 %v1457_v53, %v415_v35  ;;  %v461_v6 = vmul.f32 %v1453_v47, %v460_v54  ;;  %vm447_vm7 = vmor %vm445_vm6, %vm446_vm4  ;;  %v1459_v42 = vpop.eup %1458  ;;  %vm456_vm11 = vweird.f32 %v1457_v53 }
  0xa4   : > { %v441_v57 = vmul.f32 %v1455_v48, %v440_v52  ;;  %v438_v17 = vsel %vm437_vm5, %v1451_v34, %v434_v3  ;;  %v1461_v34 = vpop.eup %1460  ;;  %vm457_vm13 = vmor %vm455_vm10, %vm456_vm11  ;;  %vm476_vm15 = vweird.f32 %v1459_v42 }
  0xa5   : > { %v451_v15 = vmul.f32 %v1457_v53, %v450_v62  ;;  %v462_v21 = vmul.f32 0.5, %v461_v6  ;;  %v589_v26 = vmul.f32 %v438_v17, %v1649_v2  ;;  %v590_v29 = vmul.f32 %v438_v17, %v1656_v5  ;;  %v380_v2 = vpop.xlane.xlu1 %379  ;;  %vm477_vm3 = vmor %vm475_vm14, %vm476_vm15 }
  0xa6   : > { %v442_v63 = vmul.f32 0.5, %v441_v57  ;;  %v470_v5 = vmul.f32 %v1459_v42, %v1857_v60  ;;  %v1870_v52 = vmax.f32 %v380_v2, 1e-24  ;;  %vm486_vm2 = vweird.f32 %v1461_v34 }
  0xa7   : > { %v452_v41 = vmul.f32 0.5, %v451_v15  ;;  %v463_v38 = vsub.f32 1.5, %v462_v21  ;;  %vm487_vm4 = vmor %vm485_vm1, %vm486_vm2 }
  0xa8   : > { %v443_v11 = vsub.f32 1.5, %v442_v63  ;;  %v471_v59 = vmul.f32 %v1459_v42, %v470_v5  ;;  %1462 = vrsqrt.f32 %v1870_v52  ;;  %vm505_vm5 = vweird.f32 %v1870_v52 }
  0xa9   : > { %v453_v50 = vsub.f32 1.5, %v452_v41 }
  0xaa   : > { %v444_v18 = vmul.f32 %v1455_v48, %v443_v11  ;;  %v472_v6 = vmul.f32 0.5, %v471_v59 }
  0xab   : > { %v454_v54 = vmul.f32 %v1457_v53, %v453_v50 }
  0xac   : > { %v448_v24 = vsel %vm447_vm7, %v1455_v48, %v444_v18  ;;  %v464_v48 = vmul.f32 %v1453_v47, %v463_v38 }
  0xad   : > { %v591_v27 = vmul.f32 %v448_v24, %v1687_v19  ;;  %v592_v32 = vmul.f32 %v448_v24, %v1666_v9  ;;  %v480_v19 = vmul.f32 %v1461_v34, %v1859_v4  ;;  %v376_v9 = vpop.xlane.xlu0 %375  ;;  %v458_v35 = vsel %vm457_vm13, %v1457_v53, %v454_v54 }
  0xae   : > { %v1872_v57 = vmax.f32 %v376_v9, 1e-24  ;;  %v468_v30 = vsel %vm467_vm12, %v1453_v47, %v464_v48  ;;  %v593_v15 = vmul.f32 %v458_v35, %v1643_v0  ;;  %v594_v17 = vmul.f32 %v458_v35, %v1646_v1  ;;  %v1463_v24 = vpop.eup %1462 }
  0xaf   : > { %v621_v45 = vpack.c.bf16 %v591_v27, %v589_v26  ;;  %v622_v46 = vpack.c.bf16 %v592_v32, %v590_v29  ;;  %v481_v62 = vmul.f32 %v1461_v34, %v480_v19  ;;  %v595_v63 = vmul.f32 %v468_v30, %v1673_v12 }
  0xb0   : > { %1464 = vrsqrt.f32 %v1872_v57  ;;  %v596_v3 = vmul.f32 %v468_v30, %v1661_v7  ;;  %v473_v26 = vsub.f32 1.5, %v472_v6  ;;  %v384_v7 = vpop.xlane.xlu2 %383  ;;  %v500_v0 = vmul.f32 %v1463_v24, %v1870_v52 }
  0xb1   : > { %777 = vmatmul.bf16.vlgmr.msra.gmra.mxu0 %v621_v45  ;;  %1299 = vmatmul.msk.bf16.vlgmr.msra.gmra.mxu1 %vm348_vm0, %v622_v46  ;;  %v482_v11 = vmul.f32 0.5, %v481_v62  ;;  %v623_v18 = vpack.c.bf16 %v595_v63, %v593_v15  ;;  %v1885_v32 = vmax.f32 %v384_v7, 1e-24  ;;  %vm506_vm6 = vweird.f32 %v1463_v24 }
  0xb2   : > { %v624_v21 = vpack.c.bf16 %v596_v3, %v594_v17  ;;  %v474_v53 = vmul.f32 %v1459_v42, %v473_v26  ;;  %v501_v41 = vmul.f32 %v1463_v24, %v500_v0  ;;  %vm495_vm7 = vweird.f32 %v1872_v57  ;;  %vm507_vm9 = vmor %vm505_vm5, %vm506_vm6 }
  0xb3   : > { %v483_v47 = vsub.f32 1.5, %v482_v11  ;;  %1466 = vrsqrt.f32 %v1885_v32  ;;  %vm515_vm11 = vweird.f32 %v1885_v32 }
  0xb4   : > { %v478_v46 = vsel %vm477_vm3, %v1459_v42, %v474_v53  ;;  %v502_v19 = vmul.f32 0.5, %v501_v41 }
  0xb5   : > { %v388_v12 = vpop.xlane.xlu0 %387  ;;  %v484_v27 = vmul.f32 %v1461_v34, %v483_v47  ;;  %v597_v4 = vmul.f32 %v478_v46, %v1669_v10  ;;  %v598_v50 = vmul.f32 %v478_v46, %v1678_v14 }
  0xb6   : > { %v1465_v29 = vpop.eup %1464  ;;  %v1887_v60 = vmax.f32 %v388_v12, 1e-24  ;;  %v503_v42 = vsub.f32 1.5, %v502_v19 }
  0xb7   : > { %v490_v1 = vmul.f32 %v1465_v29, %v1872_v57  ;;  %v488_v38 = vsel %vm487_vm4, %v1461_v34, %v484_v27  ;;  %vm496_vm8 = vweird.f32 %v1465_v29 }
  0xb8   : > { %1468 = vrsqrt.f32 %v1887_v60  ;;  %v599_v2 = vmul.f32 %v488_v38, %v1697_v25  ;;  %v600_v5 = vmul.f32 %v488_v38, %v1683_v16  ;;  %v396_v14 = vpop.xlane.xlu2 %395  ;;  %v392_v16 = vpop.xlane.xlu1 %391  ;;  %v504_v35 = vmul.f32 %v1463_v24, %v503_v42  ;;  %vm497_vm10 = vmor %vm495_vm7, %vm496_vm8 }
  0xb9   : > { %v491_v45 = vmul.f32 %v1465_v29, %v490_v1  ;;  %v1467_v48 = vpop.eup %1466  ;;  %v1900_v63 = vmax.f32 %v396_v14, 1e-24  ;;  %v423_v3 = vmax.f32 %v392_v16, 1e-24  ;;  %vm525_vm13 = vweird.f32 %v1887_v60 }
  0xba   : > { %v625_v54 = vpack.c.bf16 %v599_v2, %v597_v4  ;;  %v626_v59 = vpack.c.bf16 %v600_v5, %v598_v50  ;;  %v510_v10 = vmul.f32 %v1467_v48, %v1885_v32  ;;  %v508_v15 = vsel %vm507_vm9, %v1463_v24, %v504_v35 }
  0xbb   : > { %v492_v9 = vmul.f32 0.5, %v491_v45  ;;  %1470 = vrsqrt.f32 %v1900_v63  ;;  %v604_v26 = vmul.f32 %v508_v15, %v1706_v31  ;;  %vm516_vm12 = vweird.f32 %v1467_v48 }
  0xbc   : > { %v511_v52 = vmul.f32 %v1467_v48, %v510_v10  ;;  %1472 = vrsqrt.f32 %v423_v3  ;;  %vm517_vm15 = vmor %vm515_vm11, %vm516_vm12  ;;  %vm535_vm2 = vweird.f32 %v423_v3  ;;  %vm545_vm4 = vweird.f32 %v1900_v63 }
  0xbd   : > { %v493_v34 = vsub.f32 1.5, %v492_v9  ;;  %v400_v24 = vpop.xlane.xlu0 %399 }
  0xbe   : > { %v1469_v62 = vpop.eup %1468  ;;  %v512_v57 = vmul.f32 0.5, %v511_v52  ;;  %v1913_v32 = vmax.f32 %v400_v24, 1e-24 }
  0xbf   : > { %v520_v25 = vmul.f32 %v1469_v62, %v1887_v60  ;;  %v494_v30 = vmul.f32 %v1465_v29, %v493_v34  ;;  %vm526_vm14 = vweird.f32 %v1469_v62 }
  0xc0   : > { %v513_v12 = vsub.f32 1.5, %v512_v57  ;;  %vm527_vm1 = vmor %vm525_vm13, %vm526_vm14 }
  0xc1   : > { %782 = vmatmul.bf16.gmra.mxu0 %v623_v18  ;;  %1300 = vmatmul.msk.bf16.gmra.mxu1 %vm348_vm0, %v624_v21  ;;  %v521_v6 = vmul.f32 %v1469_v62, %v520_v25  ;;  %v498_v11 = vsel %vm497_vm10, %v1465_v29, %v494_v30  ;;  %v603_v21 = vmul.f32 %v508_v15, %v1715_v37  ;;  %v1471_v7 = vpop.eup %1470  ;;  %v404_v37 = vpop.xlane.xlu1 %403  ;;  %vm555_vm10 = vweird.f32 %v1913_v32 }
  0xc2   : > { %v601_v17 = vmul.f32 %v498_v11, %v1723_v40  ;;  %v602_v18 = vmul.f32 %v498_v11, %v1711_v33  ;;  %v1473_v53 = vpop.eup %1472  ;;  %v514_v40 = vmul.f32 %v1467_v48, %v513_v12  ;;  %v540_v31 = vmul.f32 %v1471_v7, %v1900_v63 }
  0xc3   : > { %v522_v47 = vmul.f32 0.5, %v521_v6  ;;  %v530_v33 = vmul.f32 %v1473_v53, %v423_v3  ;;  %v1911_v41 = vmax.f32 %v404_v37, 1e-24  ;;  %vm536_vm3 = vweird.f32 %v1473_v53 }
  0xc4   : > { %v627_v0 = vpack.c.bf16 %v603_v21, %v601_v17  ;;  %v628_v1 = vpack.c.bf16 %v604_v26, %v602_v18  ;;  %v518_v46 = vsel %vm517_vm15, %v1467_v48, %v514_v40  ;;  %v541_v38 = vmul.f32 %v1471_v7, %v540_v31  ;;  %vm537_vm6 = vmor %vm535_vm2, %vm536_vm3 }
  0xc5   : > { %v523_v29 = vsub.f32 1.5, %v522_v47  ;;  %v531_v45 = vmul.f32 %v1473_v53, %v530_v33  ;;  %1474 = vrsqrt.f32 %v1911_v41  ;;  %v605_v60 = vmul.f32 %v518_v46, %v1730_v44  ;;  %v408_v44 = vpop.xlane.xlu2 %407  ;;  %v412_v14 = vpop.xlane.xlu0 %411 }
  0xc6   : > { %v606_v50 = vmul.f32 %v518_v46, %v1720_v39  ;;  %1476 = vrsqrt.f32 %v1913_v32  ;;  %v542_v9 = vmul.f32 0.5, %v541_v38  ;;  %v1396_v39 = vld [vmem:[%s2080_s3 + $0x38] sm:$0xff]  ;;  %vm546_vm5 = vweird.f32 %v1471_v7 }
  0xc7   : > { %v524_v27 = vmul.f32 %v1469_v62, %v523_v29  ;;  %v532_v2 = vmul.f32 0.5, %v531_v45  ;;  %959 = vmatpush.bf16.msra.mxu2 %v1396_v39  ;;  %vm547_vm7 = vmor %vm545_vm4, %vm546_vm5  ;;  %v427_v25 = vmax.f32 %v408_v44, 1e-24  ;;  %v1928_v30 = vmax.f32 %v412_v14, 1e-24  ;;  %v1393_v29 = vld [vmem:[%s2080_s3 + $0x20] sm:$0xff] }
  0xc8   : > { %v543_v34 = vsub.f32 1.5, %v542_v9  ;;  %vm565_vm8 = vweird.f32 %v1911_v41 }
  0xc9   : > { %v528_v4 = vsel %vm527_vm1, %v1469_v62, %v524_v27  ;;  %1478 = vrsqrt.f32 %v427_v25  ;;  %vm575_vm14 = vweird.f32 %v427_v25  ;;  %vm585_vm1 = vweird.f32 %v1928_v30 }
  0xca   : > { %v607_v5 = vmul.f32 %v528_v4, %v1756_v58  ;;  %v608_v19 = vmul.f32 %v528_v4, %v1744_v51  ;;  %v544_v16 = vmul.f32 %v1471_v7, %v543_v34  ;;  %1480 = vrsqrt.f32 %v1928_v30 }
  0xcb   : > { %v1475_v48 = vpop.eup %1474 }
  0xcc   : > { %v630_v42 = vpack.c.bf16 %v608_v19, %v606_v50  ;;  %v1477_v62 = vpop.eup %1476  ;;  %v560_v58 = vmul.f32 %v1475_v48, %v1911_v41  ;;  %v548_v6 = vsel %vm547_vm7, %v1471_v7, %v544_v16  ;;  %vm566_vm9 = vweird.f32 %v1475_v48 }
  0xcd   : > { %v550_v10 = vmul.f32 %v1477_v62, %v1913_v32  ;;  %v611_v15 = vmul.f32 %v548_v6, %v1761_v61  ;;  %v612_v57 = vmul.f32 %v548_v6, %v1748_v55  ;;  %vm556_vm11 = vweird.f32 %v1477_v62  ;;  %v1394_v55 = vld [vmem:[%s2080_s3 + $0x28] sm:$0xff]  ;;  %vm567_vm12 = vmor %vm565_vm8, %vm566_vm9 }
  0xce   : > { %v561_v52 = vmul.f32 %v1475_v48, %v560_v58  ;;  %vm557_vm13 = vmor %vm555_vm10, %vm556_vm11 }
  0xcf   : > { %v551_v3 = vmul.f32 %v1477_v62, %v550_v10  ;;  %v1479_v47 = vpop.eup %1478 }
  0xd0   : > { %v562_v17 = vmul.f32 0.5, %v561_v52  ;;  %vm576_vm15 = vweird.f32 %v1479_v47 }
  0xd1   : > { %787 = vmatmul.bf16.gmra.mxu0 %v625_v54  ;;  %1301 = vmatmul.msk.bf16.gmra.mxu1 %vm348_vm0, %v626_v59  ;;  %v533_v54 = vsub.f32 1.5, %v532_v2  ;;  %v629_v59 = vpack.c.bf16 %v607_v5, %v605_v60  ;;  %v552_v18 = vmul.f32 0.5, %v551_v3  ;;  %v1392_v60 = vld [vmem:[%s2080_s3 + $0x18] sm:$0xff]  ;;  %vm577_vm3 = vmor %vm575_vm14, %vm576_vm15 }
  0xd2   : > { %v563_v12 = vsub.f32 1.5, %v562_v17 }
  0xd3   : > { %v534_v51 = vmul.f32 %v1473_v53, %v533_v54 }
  0xd5   : > { %v538_v35 = vsel %vm537_vm6, %v1473_v53, %v534_v51  ;;  %v564_v53 = vmul.f32 %v1475_v48, %v563_v12 }
  0xd6   : > { %v609_v63 = vmul.f32 %v538_v35, %v1751_v56  ;;  %v610_v11 = vmul.f32 %v538_v35, %v1739_v49  ;;  %v1395_v49 = vld [vmem:[%s2080_s3 + $0x30] sm:$0xff]  ;;  %v570_v56 = vmul.f32 %v1479_v47, %v427_v25 }
  0xd7   : > { %960 = vmatpush.bf16.msra.mxu2 %v1395_v49  ;;  %v568_v31 = vsel %vm567_vm12, %v1475_v48, %v564_v53  ;;  %v1389_v48 = vld [vmem:[%s2080_s3] sm:$0xff] }
  0xd8   : > { %v631_v21 = vpack.c.bf16 %v611_v15, %v609_v63  ;;  %v632_v26 = vpack.c.bf16 %v612_v57, %v610_v11  ;;  %v571_v33 = vmul.f32 %v1479_v47, %v570_v56  ;;  %v615_v41 = vmul.f32 %v568_v31, %v1781_v20 }
  0xd9   : > { %v616_v45 = vmul.f32 %v568_v31, %v1772_v8  ;;  %v1391_v8 = vld [vmem:[%s2080_s3 + $0x10] sm:$0xff] }
  0xda   : > { %v572_v32 = vmul.f32 0.5, %v571_v33 }
  0xdb   : > { %961 = vmatpush.bf16.msra.mxu2 %v1394_v55 }
  0xdc   : > { %v573_v50 = vsub.f32 1.5, %v572_v32 }
  0xdf   : > { %962 = vmatpush.bf16.msra.mxu2 %v1393_v29 }
  0xe1   : > { %792 = vmatmul.bf16.gmra.mxu0 %v627_v0  ;;  %1302 = vmatmul.msk.bf16.gmra.mxu1 %vm348_vm0, %v628_v1  ;;  %v553_v0 = vsub.f32 1.5, %v552_v18  ;;  %v1481_v1 = vpop.eup %1480 }
  0xe2   : > { %v580_v61 = vmul.f32 %v1481_v1, %v1928_v30  ;;  %vm586_vm2 = vweird.f32 %v1481_v1 }
  0xe3   : > { %v554_v7 = vmul.f32 %v1477_v62, %v553_v0  ;;  %963 = vmatpush.bf16.msra.mxu2 %v1392_v60  ;;  %vm587_vm4 = vmor %vm585_vm1, %vm586_vm2 }
  0xe4   : > { %v581_v37 = vmul.f32 %v1481_v1, %v580_v61 }
  0xe5   : > { %v558_v40 = vsel %vm557_vm13, %v1477_v62, %v554_v7 }
  0xe6   : > { %v613_v24 = vmul.f32 %v558_v40, %v1789_v23  ;;  %v614_v27 = vmul.f32 %v558_v40, %v1777_v13  ;;  %v582_v46 = vmul.f32 0.5, %v581_v37  ;;  %v574_v13 = vmul.f32 %v1479_v47, %v573_v50  ;;  %v1390_v23 = vld [vmem:[%s2080_s3 + $0x8] sm:$0xff] }
  0xe7   : > { %964 = vmatpush.bf16.msra.mxu2 %v1391_v8 }
  0xe8   : > { %v633_v38 = vpack.c.bf16 %v615_v41, %v613_v24  ;;  %v634_v4 = vpack.c.bf16 %v616_v45, %v614_v27  ;;  %v583_v2 = vsub.f32 1.5, %v582_v46  ;;  %v578_v5 = vsel %vm577_vm3, %v1479_v47, %v574_v13 }
  0xe9   : > { %v617_v9 = vmul.f32 %v578_v5, %v1796_v28  ;;  %v618_v54 = vmul.f32 %v578_v5, %v1786_v22  ;;  %v1974_v22 = vld [vmem:[%s2079_s2] ss:$0 sm:$0xff] }
  0xea   : > { %v584_v20 = vmul.f32 %v1481_v1, %v583_v2 }
  0xeb   : > { %965 = vmatpush.bf16.msra.mxu2 %v1390_v23 }
  0xec   : > { %v588_v19 = vsel %vm587_vm4, %v1481_v1, %v584_v20 }
  0xef   : > { %966 = vmatpush.bf16.msra.mxu2 %v1389_v48 }
  0xf1   : > { %797 = vmatmul.bf16.gmra.mxu0 %v629_v59  ;;  %1303 = vmatmul.msk.bf16.gmra.mxu1 %vm348_vm0, %v630_v42  ;;  %v619_v59 = vmul.f32 %v588_v19, %v1811_v43  ;;  %v620_v42 = vmul.f32 %v588_v19, %v1807_v36 }
  0xf3   : > { %v635_v34 = vpack.c.bf16 %v619_v59, %v617_v9  ;;  %v636_v62 = vpack.c.bf16 %v620_v42, %v618_v54 }
 0x101   : > { %802 = vmatmul.bf16.gmra.mxu0 %v631_v21  ;;  %1304 = vmatmul.msk.bf16.gmra.mxu1 %vm348_vm0, %v632_v26 }
 0x111   : > { %807 = vmatmul.bf16.gmra.mxu0 %v633_v38  ;;  %1305 = vmatmul.msk.bf16.gmra.mxu1 %vm348_vm0, %v634_v4 }
 0x121   : > { %812 = vmatmul.bf16.gmra.mxu0 %v635_v34  ;;  %1306 = vmatmul.msk.bf16.gmra.mxu1 %vm348_vm0, %v636_v62 }
 0x12e   : > { %v778_v39 = vpop.f32.mrf.mxu0  ;;  %v827_v44 = vpop.f32.mrf.mxu1 }
 0x12f   : > { %v779_v28 = vadd.f32 %v1974_v22, %v778_v39 }
 0x131   : > { %v828_v51 = vadd.f32 %v827_v44, %v779_v28 }
 0x133   : > { %v867_v14 = vmax.f32 %v828_v51, 0.0  ;;  %v1404_v51 = vld [vmem:[%s2082_s5 + $0x38] sm:$0xff] }
 0x134   : > { %1100 = vmatpush.bf16.msra.mxu3 %v1404_v51 }
 0x136   : > { %v780_v36 = vpop.f32.mrf.mxu0  ;;  %v829_v43 = vpop.f32.mrf.mxu1 }
 0x137   : > { %v781_v58 = vadd.f32 %v1974_v22, %v780_v36 }
 0x139   : > { %v830_v10 = vadd.f32 %v829_v43, %v781_v58  ;;  %v1403_v58 = vld [vmem:[%s2082_s5 + $0x30] sm:$0xff] }
 0x13a   : > { %1101 = vmatpush.bf16.msra.mxu3 %v1403_v58 }
 0x13b   : > { %v868_v16 = vmax.f32 %v830_v10, 0.0 }
 0x13d   : > { %v883_v25 = vpack.c.bf16 %v868_v16, %v867_v14  ;;  %v1402_v14 = vld [vmem:[%s2082_s5 + $0x28] sm:$0xff] }
 0x13e   : > { %v783_v30 = vpop.f32.mrf.mxu0  ;;  %v832_v35 = vpop.f32.mrf.mxu1  ;;  %1102 = vmatpush.bf16.msra.mxu3 %v1402_v14 }
 0x13f   : > { %967 = vmatmul.bf16.vlgmr.msra.gmra.mxu2 %v883_v25  ;;  %v784_v52 = vadd.f32 %v1974_v22, %v783_v30 }
 0x141   : > { %v833_v63 = vadd.f32 %v832_v35, %v784_v52 }
 0x143   : > { %v869_v57 = vmax.f32 %v833_v63, 0.0 }
 0x146   : > { %v785_v3 = vpop.f32.mrf.mxu0  ;;  %v834_v6 = vpop.f32.mrf.mxu1 }
 0x147   : > { %v786_v11 = vadd.f32 %v1974_v22, %v785_v3  ;;  %v1401_v3 = vld [vmem:[%s2082_s5 + $0x20] sm:$0xff] }
 0x148   : > { %1103 = vmatpush.bf16.msra.mxu3 %v1401_v3 }
 0x149   : > { %v835_v15 = vadd.f32 %v834_v6, %v786_v11 }
 0x14b   : > { %v870_v17 = vmax.f32 %v835_v15, 0.0 }
 0x14d   : > { %v884_v18 = vpack.c.bf16 %v870_v17, %v869_v57  ;;  %v1400_v17 = vld [vmem:[%s2082_s5 + $0x18] sm:$0xff] }
 0x14e   : > { %v788_v21 = vpop.f32.mrf.mxu0  ;;  %v837_v26 = vpop.f32.mrf.mxu1  ;;  %1104 = vmatpush.bf16.msra.mxu3 %v1400_v17 }
 0x14f   : > { %972 = vmatmul.bf16.gmra.mxu2 %v884_v18  ;;  %v789_v47 = vadd.f32 %v1974_v22, %v788_v21  ;;  %v1399_v21 = vld [vmem:[%s2082_s5 + $0x10] sm:$0xff] }
 0x151   : > { %v838_v1 = vadd.f32 %v837_v26, %v789_v47 }
 0x152   : > { %1105 = vmatpush.bf16.msra.mxu3 %v1399_v21 }
 0x153   : > { %v871_v56 = vmax.f32 %v838_v1, 0.0 }
 0x156   : > { %v790_v12 = vpop.f32.mrf.mxu0  ;;  %v839_v0 = vpop.f32.mrf.mxu1 }
 0x157   : > { %v791_v49 = vadd.f32 %v1974_v22, %v790_v12 }
 0x159   : > { %v840_v55 = vadd.f32 %v839_v0, %v791_v49  ;;  %v1398_v49 = vld [vmem:[%s2082_s5 + $0x8] sm:$0xff] }
 0x15a   : > { %1106 = vmatpush.bf16.msra.mxu3 %v1398_v49 }
 0x15b   : > { %v872_v61 = vmax.f32 %v840_v55, 0.0 }
 0x15d   : > { %v885_v7 = vpack.c.bf16 %v872_v61, %v871_v56 }
 0x15e   : > { %v793_v53 = vpop.f32.mrf.mxu0  ;;  %v842_v29 = vpop.f32.mrf.mxu1 }
 0x15f   : > { %977 = vmatmul.bf16.gmra.mxu2 %v885_v7  ;;  %v794_v33 = vadd.f32 %v1974_v22, %v793_v53  ;;  %v1397_v7 = vld [vmem:[%s2082_s5] sm:$0xff] }
 0x160   : > { %1107 = vmatpush.bf16.msra.mxu3 %v1397_v7 }
 0x161   : > { %v843_v31 = vadd.f32 %v842_v29, %v794_v33 }
 0x163   : > { %v873_v41 = vmax.f32 %v843_v31, 0.0 }
 0x166   : > { %v795_v37 = vpop.f32.mrf.mxu0  ;;  %v844_v40 = vpop.f32.mrf.mxu1 }
 0x167   : > { %v796_v24 = vadd.f32 %v1974_v22, %v795_v37 }
 0x169   : > { %v845_v27 = vadd.f32 %v844_v40, %v796_v24 }
 0x16b   : > { %v874_v45 = vmax.f32 %v845_v27, 0.0 }
 0x16d   : > { %v886_v32 = vpack.c.bf16 %v874_v45, %v873_v41 }
 0x16e   : > { %v798_v46 = vpop.f32.mrf.mxu0  ;;  %v847_v38 = vpop.f32.mrf.mxu1 }
 0x16f   : > { %982 = vmatmul.bf16.gmra.mxu2 %v886_v32  ;;  %v799_v4 = vadd.f32 %v1974_v22, %v798_v46 }
 0x171   : > { %v848_v2 = vadd.f32 %v847_v38, %v799_v4 }
 0x173   : > { %v875_v20 = vmax.f32 %v848_v2, 0.0 }
 0x176   : > { %v800_v60 = vpop.f32.mrf.mxu0  ;;  %v849_v50 = vpop.f32.mrf.mxu1 }
 0x177   : > { %v801_v8 = vadd.f32 %v1974_v22, %v800_v60 }
 0x179   : > { %v850_v13 = vadd.f32 %v849_v50, %v801_v8 }
 0x17b   : > { %v876_v23 = vmax.f32 %v850_v13, 0.0 }
 0x17d   : > { %v887_v5 = vpack.c.bf16 %v876_v23, %v875_v20 }
 0x17e   : > { %v803_v19 = vpop.f32.mrf.mxu0  ;;  %v852_v9 = vpop.f32.mrf.mxu1 }
 0x17f   : > { %987 = vmatmul.bf16.gmra.mxu2 %v887_v5  ;;  %v804_v54 = vadd.f32 %v1974_v22, %v803_v19 }
 0x181   : > { %v853_v48 = vadd.f32 %v852_v9, %v804_v54 }
 0x183   : > { %v877_v39 = vmax.f32 %v853_v48, 0.0 }
 0x186   : > { %v805_v59 = vpop.f32.mrf.mxu0  ;;  %v854_v42 = vpop.f32.mrf.mxu1 }
 0x187   : > { %v806_v34 = vadd.f32 %v1974_v22, %v805_v59 }
 0x189   : > { %v855_v62 = vadd.f32 %v854_v42, %v806_v34 }
 0x18b   : > { %v878_v44 = vmax.f32 %v855_v62, 0.0 }
 0x18d   : > { %v888_v28 = vpack.c.bf16 %v878_v44, %v877_v39 }
 0x18e   : > { %v808_v36 = vpop.f32.mrf.mxu0  ;;  %v857_v43 = vpop.f32.mrf.mxu1 }
 0x18f   : > { %992 = vmatmul.bf16.gmra.mxu2 %v888_v28  ;;  %v809_v10 = vadd.f32 %v1974_v22, %v808_v36 }
 0x191   : > { %v858_v30 = vadd.f32 %v857_v43, %v809_v10 }
 0x193   : > { %v879_v6 = vmax.f32 %v858_v30, 0.0 }
 0x196   : > { %v810_v16 = vpop.f32.mrf.mxu0  ;;  %v859_v25 = vpop.f32.mrf.mxu1 }
 0x197   : > { %v811_v35 = vadd.f32 %v1974_v22, %v810_v16 }
 0x199   : > { %v860_v52 = vadd.f32 %v859_v25, %v811_v35 }
 0x19b   : > { %v880_v63 = vmax.f32 %v860_v52, 0.0 }
 0x19d   : > { %v889_v11 = vpack.c.bf16 %v880_v63, %v879_v6 }
 0x19e   : > { %v813_v15 = vpop.f32.mrf.mxu0  ;;  %v862_v57 = vpop.f32.mrf.mxu1 }
 0x19f   : > { %997 = vmatmul.bf16.gmra.mxu2 %v889_v11  ;;  %v814_v18 = vadd.f32 %v1974_v22, %v813_v15 }
 0x1a1   : > { %v863_v47 = vadd.f32 %v862_v57, %v814_v18 }
 0x1a3   : > { %v881_v55 = vmax.f32 %v863_v47, 0.0 }
 0x1a6   : > { %v815_v26 = vpop.f32.mrf.mxu0  ;;  %v864_v0 = vpop.f32.mrf.mxu1 }
 0x1a7   : > { %v816_v12 = vadd.f32 %v1974_v22, %v815_v26  ;;  %v1448_v22 = vld [vmem:[%s2081_s4] ss:$0 sm:$0xff] }
 0x1a9   : > { %v865_v1 = vadd.f32 %v864_v0, %v816_v12  ;;  %v1449_v0 = vld [vmem:[%s2083_s6] ss:$0 sm:$0xff] }
 0x1ab   : > { %v882_v56 = vmax.f32 %v865_v1, 0.0 }
 0x1ad   : > { %v890_v61 = vpack.c.bf16 %v882_v56, %v881_v55 }
 0x1af   : > { %1002 = vmatmul.bf16.gmra.mxu2 %v890_v61 }
 0x1c2   : > { %v968_v53 = vpop.f32.mrf.mxu2 }
 0x1c3   : > { %v969_v29 = vadd.f32 %v1448_v22, %v968_v53 }
 0x1c5   : > { %v1008_v40 = vmax.f32 %v969_v29, 0.0 }
 0x1ca   : > { %v970_v33 = vpop.f32.mrf.mxu2 }
 0x1cb   : > { %v971_v37 = vadd.f32 %v1448_v22, %v970_v33 }
 0x1cd   : > { %v1009_v31 = vmax.f32 %v971_v37, 0.0 }
 0x1cf   : > { %v1024_v24 = vpack.c.bf16 %v1009_v31, %v1008_v40 }
 0x1d1   : > { %1108 = vmatmul.bf16.vlgmr.msra.gmra.mxu3 %v1024_v24 }
 0x1d2   : > { %v973_v27 = vpop.f32.mrf.mxu2 }
 0x1d3   : > { %v974_v41 = vadd.f32 %v1448_v22, %v973_v27 }
 0x1d5   : > { %v1010_v46 = vmax.f32 %v974_v41, 0.0 }
 0x1da   : > { %v975_v45 = vpop.f32.mrf.mxu2 }
 0x1db   : > { %v976_v32 = vadd.f32 %v1448_v22, %v975_v45 }
 0x1dd   : > { %v1011_v38 = vmax.f32 %v976_v32, 0.0 }
 0x1df   : > { %v1025_v4 = vpack.c.bf16 %v1011_v38, %v1010_v46 }
 0x1e1   : > { %1113 = vmatmul.bf16.gmra.mxu3 %v1025_v4 }
 0x1e2   : > { %v978_v60 = vpop.f32.mrf.mxu2 }
 0x1e3   : > { %v979_v50 = vadd.f32 %v1448_v22, %v978_v60 }
 0x1e5   : > { %v1012_v13 = vmax.f32 %v979_v50, 0.0 }
 0x1ea   : > { %v980_v2 = vpop.f32.mrf.mxu2 }
 0x1eb   : > { %v981_v8 = vadd.f32 %v1448_v22, %v980_v2 }
 0x1ed   : > { %v1013_v20 = vmax.f32 %v981_v8, 0.0 }
 0x1ef   : > { %v1026_v23 = vpack.c.bf16 %v1013_v20, %v1012_v13 }
 0x1f1   : > { %1118 = vmatmul.bf16.gmra.mxu3 %v1026_v23 }
 0x1f2   : > { %v983_v5 = vpop.f32.mrf.mxu2 }
 0x1f3   : > { %v984_v19 = vadd.f32 %v1448_v22, %v983_v5 }
 0x1f5   : > { %v1014_v59 = vmax.f32 %v984_v19, 0.0 }
 0x1fa   : > { %v985_v9 = vpop.f32.mrf.mxu2 }
 0x1fb   : > { %v986_v54 = vadd.f32 %v1448_v22, %v985_v9 }
 0x1fd   : > { %v1015_v42 = vmax.f32 %v986_v54, 0.0 }
 0x1ff   : > { %v1027_v48 = vpack.c.bf16 %v1015_v42, %v1014_v59 }
 0x201   : > { %1123 = vmatmul.bf16.gmra.mxu3 %v1027_v48 }
 0x202   : > { %v988_v34 = vpop.f32.mrf.mxu2 }
 0x203   : > { %v989_v62 = vadd.f32 %v1448_v22, %v988_v34 }
 0x205   : > { %v1016_v28 = vmax.f32 %v989_v62, 0.0 }
 0x20a   : > { %v990_v39 = vpop.f32.mrf.mxu2 }
 0x20b   : > { %v991_v44 = vadd.f32 %v1448_v22, %v990_v39 }
 0x20d   : > { %v1017_v36 = vmax.f32 %v991_v44, 0.0 }
 0x20f   : > { %v1028_v43 = vpack.c.bf16 %v1017_v36, %v1016_v28 }
 0x211   : > { %1128 = vmatmul.bf16.gmra.mxu3 %v1028_v43 }
 0x212   : > { %v993_v51 = vpop.f32.mrf.mxu2 }
 0x213   : > { %v994_v58 = vadd.f32 %v1448_v22, %v993_v51 }
 0x215   : > { %v1018_v16 = vmax.f32 %v994_v58, 0.0 }
 0x21a   : > { %v995_v10 = vpop.f32.mrf.mxu2 }
 0x21b   : > { %v996_v14 = vadd.f32 %v1448_v22, %v995_v10 }
 0x21d   : > { %v1019_v25 = vmax.f32 %v996_v14, 0.0 }
 0x21f   : > { %v1029_v30 = vpack.c.bf16 %v1019_v25, %v1018_v16 }
 0x221   : > { %1133 = vmatmul.bf16.gmra.mxu3 %v1029_v30 }
 0x222   : > { %v998_v35 = vpop.f32.mrf.mxu2 }
 0x223   : > { %v999_v52 = vadd.f32 %v1448_v22, %v998_v35 }
 0x225   : > { %v1020_v63 = vmax.f32 %v999_v52, 0.0 }
 0x22a   : > { %v1000_v3 = vpop.f32.mrf.mxu2 }
 0x22b   : > { %v1001_v6 = vadd.f32 %v1448_v22, %v1000_v3 }
 0x22d   : > { %v1021_v11 = vmax.f32 %v1001_v6, 0.0 }
 0x22f   : > { %v1030_v15 = vpack.c.bf16 %v1021_v11, %v1020_v63 }
 0x231   : > { %1138 = vmatmul.bf16.gmra.mxu3 %v1030_v15 }
 0x232   : > { %v1003_v57 = vpop.f32.mrf.mxu2 }
 0x233   : > { %v1004_v17 = vadd.f32 %v1448_v22, %v1003_v57 }
 0x235   : > { %v1022_v26 = vmax.f32 %v1004_v17, 0.0 }
 0x23a   : > { %v1005_v18 = vpop.f32.mrf.mxu2 }
 0x23b   : > { %v1006_v21 = vadd.f32 %v1448_v22, %v1005_v18 }
 0x23d   : > { %v1023_v47 = vmax.f32 %v1006_v21, 0.0 }
 0x23f   : > { %v1031_v12 = vpack.c.bf16 %v1023_v47, %v1022_v26 }
 0x241   : > { %1143 = vmatmul.bf16.gmra.mxu3 %v1031_v12 }
 0x254   : > { %v1109_v1 = vpop.f32.mrf.mxu3 }
 0x255   : > { %v1110_v49 = vadd.f32 %v1449_v0, %v1109_v1 }
 0x257   : > { %1149 = vst [vmem:[%s2025_s14] sm:$0xff] %v1110_v49 }
 0x25c   : > { %v1111_v55 = vpop.f32.mrf.mxu3 }
 0x25d   : > { %v1112_v56 = vadd.f32 %v1449_v0, %v1111_v55 }
 0x25f   : > { %1150 = vst [vmem:[%s2025_s14 + $0x8] sm:$0xff] %v1112_v56 }
 0x264   : > { %v1114_v61 = vpop.f32.mrf.mxu3 }
 0x265   : > { %v1115_v7 = vadd.f32 %v1449_v0, %v1114_v61 }
 0x267   : > { %1151 = vst [vmem:[%s2025_s14 + $0x10] sm:$0xff] %v1115_v7 }
 0x26c   : > { %v1116_v53 = vpop.f32.mrf.mxu3 }
 0x26d   : > { %v1117_v22 = vadd.f32 %v1449_v0, %v1116_v53 }
 0x26f   : > { %1152 = vst [vmem:[%s2025_s14 + $0x18] sm:$0xff] %v1117_v22 }
 0x274   : > { %v1119_v29 = vpop.f32.mrf.mxu3 }
 0x275   : > { %v1120_v33 = vadd.f32 %v1449_v0, %v1119_v29 }
 0x277   : > { %1153 = vst [vmem:[%s2025_s14 + $0x20] sm:$0xff] %v1120_v33 }
 0x27c   : > { %v1121_v37 = vpop.f32.mrf.mxu3 }
 0x27d   : > { %v1122_v40 = vadd.f32 %v1449_v0, %v1121_v37 }
 0x27f   : > { %1154 = vst [vmem:[%s2025_s14 + $0x28] sm:$0xff] %v1122_v40 }
 0x284   : > { %v1124_v31 = vpop.f32.mrf.mxu3 }
 0x285   : > { %v1125_v24 = vadd.f32 %v1449_v0, %v1124_v31 }
 0x287   : > { %1155 = vst [vmem:[%s2025_s14 + $0x30] sm:$0xff] %v1125_v24 }
 0x28c   : > { %v1126_v27 = vpop.f32.mrf.mxu3 }
 0x28d   : > { %v1127_v41 = vadd.f32 %v1449_v0, %v1126_v27 }
 0x28f   : > { %1156 = vst [vmem:[%s2025_s14 + $0x38] sm:$0xff] %v1127_v41 }
 0x294   : > { %v1129_v45 = vpop.f32.mrf.mxu3 }
 0x295   : > { %v1130_v32 = vadd.f32 %v1449_v0, %v1129_v45 }
 0x297   : > { %1157 = vst [vmem:[%s2025_s14 + $0x40] sm:$0xff] %v1130_v32 }
 0x29c   : > { %v1131_v46 = vpop.f32.mrf.mxu3 }
 0x29d   : > { %v1132_v38 = vadd.f32 %v1449_v0, %v1131_v46 }
 0x29f   : > { %1158 = vst [vmem:[%s2025_s14 + $0x48] sm:$0xff] %v1132_v38 }
 0x2a4   : > { %v1134_v4 = vpop.f32.mrf.mxu3 }
 0x2a5   : > { %v1135_v60 = vadd.f32 %v1449_v0, %v1134_v4 }
 0x2a7   : > { %1159 = vst [vmem:[%s2025_s14 + $0x50] sm:$0xff] %v1135_v60 }
 0x2ac   : > { %v1136_v50 = vpop.f32.mrf.mxu3 }
 0x2ad   : > { %v1137_v2 = vadd.f32 %v1449_v0, %v1136_v50 }
 0x2af   : > { %1160 = vst [vmem:[%s2025_s14 + $0x58] sm:$0xff] %v1137_v2 }
 0x2b4   : > { %v1139_v8 = vpop.f32.mrf.mxu3 }
 0x2b5   : > { %v1140_v13 = vadd.f32 %v1449_v0, %v1139_v8 }
 0x2b7   : > { %1161 = vst [vmem:[%s2025_s14 + $0x60] sm:$0xff] %v1140_v13 }
 0x2bc   : > { %v1141_v20 = vpop.f32.mrf.mxu3 }
 0x2bd   : > { %v1142_v23 = vadd.f32 %v1449_v0, %v1141_v20 }
 0x2bf   : > { %1162 = vst [vmem:[%s2025_s14 + $0x68] sm:$0xff] %v1142_v23 }
 0x2c4   : > { %v1144_v5 = vpop.f32.mrf.mxu3 }
 0x2c5   : > { %v1145_v19 = vadd.f32 %v1449_v0, %v1144_v5 }
 0x2c7   : > { %1163 = vst [vmem:[%s2025_s14 + $0x70] sm:$0xff] %v1145_v19 }
 0x2cc   : > { %v1146_v9 = vpop.f32.mrf.mxu3 }
 0x2cd   : > { %v1147_v54 = vadd.f32 %v1449_v0, %v1146_v9 }
 0x2cf   : > { %1164 = vst [vmem:[%s2025_s14 + $0x78] sm:$0xff] %v1147_v54 }
 0x2d0   : > { %1509 = shalt.err (!%p1506_p3)
}
 0x2d1   : > { %s1546_s29 = smov 128   ;;  %s1547_s14 = smov 8  }
 0x2d2   : > { %1406 = dma.vmem_to_hbm [thread:$0]  (%p1626_p5), %s1179_s19, 2048, %s1181_s20, %s1166_s21, %s1546_s29, %s1546_s29, %s1547_s14  }
 0x2d3 PF: > { %p1412_p4 = scmp.ge.s32.totalorder %s1544_s27, 2  ;;  %s1195_s16 = sand.u32 1, %s1532_s24  }
 0x2d4   : > { %s1196_s17 = scalar_lea.sflag [#allocation3], %s1195_s16 }
 0x2d5   : > { %p1409_p7 = pnand %p1412_p4, %p1630_p6 }
 0x2d7   : > { %p1410_p8 = pneg %p1409_p7 }
 0x2d9   : > { %1527 = dma.done.wait (%p1410_p8), %s1196_s17, 2048  }
 0x2da   : > { %1529 = vsyncadd (%p1410_p8), %s1196_s17, 4294965248  ;;  %p17_p9 = scmp.ge.s32.totalorder %s1613_s30, 4   ;;  %s2087_s24 = smov %s1536_s25 }
 0x2db   : > { %s2088_s25 = smov %s1540_s26  ;;  %s2089_s26 = smov %s1624_s10 }
 0x2dc   : > { %s2090_s27 = smov %s1613_s30  ;;  %19 = sbr.rel (!%p17_p9) target bundleno = 3 (0x3), region = 83 }
 0x2e1   :  { %1202 = vsyncpa [#allocation3], 1 }
 0x2e2   :  { %1204 = vsyncpa [#allocation3 + $0x1], 1 }

</bundles_post_ra>
